<compile_context>
chip_gen: v5e
topology: v5e:2x2
jax: 0.10.0
libtpu: 0.0.40
codegen_flags: <defaults>
</compile_context>

<pallas_src>
import functools

import jax
import jax.numpy as jnp
from jax.experimental import pallas as pl
from jax.experimental.pallas import tpu as pltpu

LN_EPS = 1e-5  # torch.nn.LayerNorm default eps (elementwise_affine=False)


# ----------------------------------------------------------------------------
# Fused kernel (single invocation, everything VMEM-resident):
#   x:(B*N, C)  w_in:(C, mlp_hidden+3C)  w_mlp:(mlp_hidden, C)  w_attn:(C, C)
#   -> o:(B*N, C)        attn_ref: (B*N, C) fp32 scratch slab
# ----------------------------------------------------------------------------
def fused_block_kernel(x_ref, w_in_ref, w_mlp_ref, w_attn_ref, o_ref, attn_ref, *,
                       batch, seq, num_heads, head_dim, mlp_hidden, dim,
                       compute_dtype):
    cd = compute_dtype
    x = x_ref[...].astype(jnp.float32)                  # (B*N, C); also residual

    # LayerNorm (no affine) — single fused stats pass; rsqrt rides the EUP slot.
    mu = jnp.mean(x, axis=-1, keepdims=True)
    ms = jnp.mean(x * x, axis=-1, keepdims=True)
    xn = (x - mu) * jax.lax.rsqrt(ms - mu * mu + LN_EPS)

    # in_proj: one (B*N, C) @ (C, mlp_hidden+3C) matmul; attn scale pre-folded
    # into the q columns in the wrapper. bf16 operands, fp32 accumulation.
    y = jnp.dot(xn.astype(cd), w_in_ref[...], preferred_element_type=jnp.float32)

    # MLP half of out_proj (output halves pre-added in the wrapper) + residual.
    acc = jnp.dot(y[:, :mlp_hidden].astype(cd), w_mlp_ref[...],
                  preferred_element_type=jnp.float32) + x

    # Attention per (batch, head); each head's output goes into ONE (B*N, C)
    # VMEM slab so the attention half of out_proj is a single K=C matmul.
    q0 = mlp_hidden
    k0 = mlp_hidden + dim
    v0 = mlp_hidden + 2 * dim
    for b in range(batch):                              # trace-time unroll (toy shapes)
        r0 = b * seq
        for h in range(num_heads):
            lo = h * head_dim
            qh = y[r0:r0 + seq, q0 + lo:q0 + lo + head_dim].astype(cd)
            kh = y[r0:r0 + seq, k0 + lo:k0 + lo + head_dim].astype(cd)
            vh = y[r0:r0 + seq, v0 + lo:v0 + lo + head_dim].astype(cd)

            # scores: contract the last dims (no explicit k transpose)
            s = jax.lax.dot_general(qh, kh, (((1,), (1,)), ((), ())),
                                    preferred_element_type=jnp.float32)   # (N, N)
            m = jnp.max(s, axis=-1, keepdims=True)
            p = jnp.exp(s - m)
            p = p * pl.reciprocal(jnp.sum(p, axis=-1, keepdims=True), approx=True)

            ah = jnp.dot(p.astype(cd), vh,
                         preferred_element_type=jnp.float32)              # (N, hd)
            attn_ref[r0:r0 + seq, lo:lo + head_dim] = ah

    # Attention half of out_proj: ONE (B*N, C) @ (C, C) matmul.
    acc = acc + jnp.dot(attn_ref[...].astype(cd), w_attn_ref[...],
                        preferred_element_type=jnp.float32)

    o_ref[...] = acc.astype(o_ref.dtype)


# ----------------------------------------------------------------------------
# Wrapper reproducing HKRPQParallelBlock.forward (attention_mask=None)
# ----------------------------------------------------------------------------
def hkrpq_parallel_block(x, w_in, w_out, num_heads, *, compute_dtype=jnp.bfloat16):
    B, N, C = x.shape
    assert C % num_heads == 0
    head_dim = C // num_heads
    in_out_dim = w_in.shape[1]                     # mlp_hidden + 3*C
    mlp_hidden = in_out_dim - 3 * C
    assert w_out.shape == (mlp_hidden + C, 2 * C)

    # Fold the 1/sqrt(head_dim) attention scale into w_in's q columns (one-time).
    scale = head_dim ** (-0.5)
    col_scale = jnp.ones((in_out_dim,), w_in.dtype)
    col_scale = col_scale.at[mlp_hidden:mlp_hidden + C].set(scale)
    w_in_s = (w_in * col_scale[None, :]).astype(compute_dtype)

    # out_proj output halves are summed in the module: pre-add the columns.
    w_eff = w_out[:, :C] + w_out[:, C:2 * C]                 # (mlp_hidden + C, C)
    w_mlp = w_eff[:mlp_hidden].astype(compute_dtype)         # (mlp_hidden, C)
    w_attn = w_eff[mlp_hidden:].astype(compute_dtype)        # (C, C)

    # Fold B into the matmul row dim so LN / in_proj / MLP see M = B*N rows.
    M = B * N
    x2 = x.reshape(M, C)

    kernel = functools.partial(
        fused_block_kernel, batch=B, seq=N, num_heads=num_heads,
        head_dim=head_dim, mlp_hidden=mlp_hidden, dim=C,
        compute_dtype=compute_dtype)

    w_itemsize = jnp.dtype(compute_dtype).itemsize
    flops = (2 * M * C * in_out_dim                     # in_proj
             + 2 * M * mlp_hidden * C                   # MLP half of out_proj
             + 4 * B * num_heads * N * N * head_dim     # q@k^T and p@v
             + 2 * M * C * C)                           # attn half of out_proj
    transcendentals = B * num_heads * N * N + M         # exp + rsqrt/rcp (approx.)
    bytes_accessed = (2 * M * C * x.dtype.itemsize
                      + (C * in_out_dim + mlp_hidden * C + C * C) * w_itemsize)

    vmem_spec = pl.BlockSpec(memory_space=pltpu.MemorySpace.VMEM)
    out2 = pl.pallas_call(
        kernel,
        out_shape=jax.ShapeDtypeStruct((M, C), x.dtype),
        # No grid: one kernel step, every operand gets exactly one VMEM copy
        # (weights effectively single-buffered; no per-step pipeline overhead).
        in_specs=[vmem_spec, vmem_spec, vmem_spec, vmem_spec],
        out_specs=vmem_spec,
        scratch_shapes=[pltpu.VMEM((M, C), jnp.float32)],   # attention-output slab
        compiler_params=pltpu.CompilerParams(
            vmem_limit_bytes=32 * 1024 * 1024),
        cost_estimate=pl.CostEstimate(flops=flops,
                                      transcendentals=transcendentals,
                                      bytes_accessed=bytes_accessed),
    )(x2, w_in_s, w_mlp, w_attn)
    return out2.reshape(B, N, C)


# ----------------------------------------------------------------------------
# Pure-JAX reference for correctness checking
# ----------------------------------------------------------------------------
def reference_block(x, w_in, w_out, num_heads):
    B, N, C = x.shape
    head_dim = C // num_heads
    mlp_hidden = w_in.shape[1] - 3 * C
    res = x
    mu = jnp.mean(x, axis=-1, keepdims=True)
    var = jnp.mean((x - mu) ** 2, axis=-1, keepdims=True)
    xn = (x - mu) / jnp.sqrt(var + LN_EPS)
    y = xn @ w_in
    x_mlp, q, k, v = jnp.split(
        y, [mlp_hidden, mlp_hidden + C, mlp_hidden + 2 * C], axis=-1)

    def heads(t):
        return t.reshape(B, N, num_heads, head_dim).transpose(0, 2, 1, 3)

    qh, kh, vh = heads(q), heads(k), heads(v)
    s = jnp.einsum('bhqd,bhkd->bhqk', qh, kh) * head_dim ** (-0.5)
    p = jax.nn.softmax(s, axis=-1)
    a = jnp.einsum('bhqk,bhkd->bhqd', p, vh)
    x_attn = a.transpose(0, 2, 1, 3).reshape(B, N, C)
    z = jnp.concatenate([x_mlp, x_attn], axis=-1) @ w_out
    return z[..., :C] + z[..., C:2 * C] + res


if __name__ == "__main__":
    # Module hyperparams (small): dim=32, num_heads=4, mlp_ratio=4
    dim, num_heads, mlp_ratio = 32, 4, 4
    B, N = 2, 8
    mlp_hidden = int(mlp_ratio * dim)            # 128
    in_proj_out_dim = mlp_hidden + 3 * dim       # 224
    out_proj_in_dim = mlp_hidden + dim           # 160
    out_proj_out_dim = 2 * dim                   # 64

    key = jax.random.PRNGKey(0)
    kx, kwin, kwout = jax.random.split(key, 3)
    x = jax.random.normal(kx, (B, N, dim), dtype=jnp.float32)
    # effective (in, out)-oriented weights of the HKRPQ linears (bias=False)
    w_in = 0.02 * jax.random.normal(kwin, (dim, in_proj_out_dim), dtype=jnp.float32)
    w_out = 0.02 * jax.random.normal(kwout, (out_proj_in_dim, out_proj_out_dim),
                                     dtype=jnp.float32)

    ref = reference_block(x, w_in, w_out, num_heads)

    # Default path: bf16 MXU operands, fp32 accumulation / LN / softmax.
    out_bf16 = jax.block_until_ready(hkrpq_parallel_block(x, w_in, w_out, num_heads))
    assert out_bf16.shape == (B, N, dim)
    assert jnp.allclose(out_bf16, ref, atol=2e-2, rtol=2e-2), "bf16 mismatch vs reference"

    # fp32 path (tight tolerance; approx-reciprocal softmax + pre-added halves).
    out_f32 = jax.block_until_ready(
        hkrpq_parallel_block(x, w_in, w_out, num_heads, compute_dtype=jnp.float32))
    assert jnp.allclose(out_f32, ref, atol=2e-3, rtol=2e-3), "fp32 mismatch vs reference"

    print("KERNEL_OK")
</pallas_src>

<mosaic_0001>
module attributes {stable_mosaic.version = 11 : i64} {
  func.func @fused_block_kernel(%arg0: memref<16x32xf32, #tpu.memory_space<vmem>>, %arg1: memref<32x224xbf16, #tpu.memory_space<vmem>>, %arg2: memref<128x32xbf16, #tpu.memory_space<vmem>>, %arg3: memref<32x32xbf16, #tpu.memory_space<vmem>>, %arg4: memref<16x32xf32, #tpu.memory_space<vmem>>, %arg5: memref<16x32xf32, #tpu.memory_space<vmem>>) attributes {dimension_semantics = [], scalar_prefetch = 0 : i64, scratch_operands = 1 : i64, tpu.core_type = #tpu.core_type<tc>} {
    %c0 = arith.constant 0 : index
    %c0_0 = arith.constant 0 : index
    %0 = vector.load %arg0[%c0, %c0_0] : memref<16x32xf32, #tpu.memory_space<vmem>>, vector<16x32xf32>
    %cst = arith.constant dense<0.000000e+00> : vector<16xf32>
    %1 = vector.multi_reduction <add>, %0, %cst [1] : vector<16x32xf32> to vector<16xf32>
    %2 = vector.shape_cast %1 : vector<16xf32> to vector<16x1xf32>
    %cst_1 = arith.constant 3.200000e+01 : f32
    %3 = vector.broadcast %cst_1 : f32 to vector<16x1xf32>
    %4 = arith.divf %2, %3 : vector<16x1xf32>
    %5 = arith.mulf %0, %0 : vector<16x32xf32>
    %cst_2 = arith.constant dense<0.000000e+00> : vector<16xf32>
    %6 = vector.multi_reduction <add>, %5, %cst_2 [1] : vector<16x32xf32> to vector<16xf32>
    %7 = vector.shape_cast %6 : vector<16xf32> to vector<16x1xf32>
    %cst_3 = arith.constant 3.200000e+01 : f32
    %8 = vector.broadcast %cst_3 : f32 to vector<16x1xf32>
    %9 = arith.divf %7, %8 : vector<16x1xf32>
    %10 = vector.broadcast %4 : vector<16x1xf32> to vector<16x32xf32>
    %11 = arith.subf %0, %10 : vector<16x32xf32>
    %12 = arith.mulf %4, %4 : vector<16x1xf32>
    %13 = arith.subf %9, %12 : vector<16x1xf32>
    %cst_4 = arith.constant 9.99999974E-6 : f32
    %14 = vector.broadcast %cst_4 : f32 to vector<16x1xf32>
    %15 = arith.addf %13, %14 : vector<16x1xf32>
    %16 = math.rsqrt %15 : vector<16x1xf32>
    %17 = vector.broadcast %16 : vector<16x1xf32> to vector<16x32xf32>
    %18 = arith.mulf %11, %17 : vector<16x32xf32>
    %19 = arith.truncf %18 : vector<16x32xf32> to vector<16x32xbf16>
    %c0_5 = arith.constant 0 : index
    %c0_6 = arith.constant 0 : index
    %20 = vector.load %arg1[%c0_5, %c0_6] : memref<32x224xbf16, #tpu.memory_space<vmem>>, vector<32x224xbf16>
    %cst_7 = arith.constant dense<0.000000e+00> : vector<16x224xf32>
    %21 = tpu.matmul %19, %20, %cst_7 {dimension_numbers = #tpu.dot_dimension_numbers<[1], [0], [0], [1], [0, 0, 1, 1], [], []>} : vector<16x32xbf16>, vector<32x224xbf16>, vector<16x224xf32> -> vector<16x224xf32>
    %22 = vector.extract_strided_slice %21 {offsets = [0, 0], sizes = [16, 128], strides = [1, 1]} : vector<16x224xf32> to vector<16x128xf32>
    %23 = arith.truncf %22 : vector<16x128xf32> to vector<16x128xbf16>
    %c0_8 = arith.constant 0 : index
    %c0_9 = arith.constant 0 : index
    %24 = vector.load %arg2[%c0_8, %c0_9] : memref<128x32xbf16, #tpu.memory_space<vmem>>, vector<128x32xbf16>
    %cst_10 = arith.constant dense<0.000000e+00> : vector<16x32xf32>
    %25 = tpu.matmul %23, %24, %cst_10 {dimension_numbers = #tpu.dot_dimension_numbers<[1], [0], [0], [1], [0, 0, 1, 1], [], []>} : vector<16x128xbf16>, vector<128x32xbf16>, vector<16x32xf32> -> vector<16x32xf32>
    %26 = arith.addf %25, %0 : vector<16x32xf32>
    %27 = vector.extract_strided_slice %21 {offsets = [0, 128], sizes = [8, 8], strides = [1, 1]} : vector<16x224xf32> to vector<8x8xf32>
    %28 = arith.truncf %27 : vector<8x8xf32> to vector<8x8xbf16>
    %29 = vector.extract_strided_slice %21 {offsets = [0, 160], sizes = [8, 8], strides = [1, 1]} : vector<16x224xf32> to vector<8x8xf32>
    %30 = arith.truncf %29 : vector<8x8xf32> to vector<8x8xbf16>
    %31 = vector.extract_strided_slice %21 {offsets = [0, 192], sizes = [8, 8], strides = [1, 1]} : vector<16x224xf32> to vector<8x8xf32>
    %32 = arith.truncf %31 : vector<8x8xf32> to vector<8x8xbf16>
    %cst_11 = arith.constant dense<0.000000e+00> : vector<8x8xf32>
    %33 = tpu.matmul %28, %30, %cst_11 {dimension_numbers = #tpu.dot_dimension_numbers<[1], [1], [0], [0], [0, 0, 1, 0], [], []>} : vector<8x8xbf16>, vector<8x8xbf16>, vector<8x8xf32> -> vector<8x8xf32>
    %cst_12 = arith.constant dense<0xFF800000> : vector<8xf32>
    %34 = vector.multi_reduction <maximumf>, %33, %cst_12 [1] : vector<8x8xf32> to vector<8xf32>
    %35 = vector.shape_cast %34 : vector<8xf32> to vector<8x1xf32>
    %36 = vector.broadcast %35 : vector<8x1xf32> to vector<8x8xf32>
    %37 = arith.subf %33, %36 : vector<8x8xf32>
    %38 = math.exp %37 : vector<8x8xf32>
    %cst_13 = arith.constant dense<0.000000e+00> : vector<8xf32>
    %39 = vector.multi_reduction <add>, %38, %cst_13 [1] : vector<8x8xf32> to vector<8xf32>
    %40 = vector.shape_cast %39 : vector<8xf32> to vector<8x1xf32>
    %41 = tpu.reciprocal %40 {approx = true} : vector<8x1xf32> -> vector<8x1xf32>
    %42 = vector.broadcast %41 : vector<8x1xf32> to vector<8x8xf32>
    %43 = arith.mulf %38, %42 : vector<8x8xf32>
    %44 = arith.truncf %43 : vector<8x8xf32> to vector<8x8xbf16>
    %cst_14 = arith.constant dense<0.000000e+00> : vector<8x8xf32>
    %45 = tpu.matmul %44, %32, %cst_14 {dimension_numbers = #tpu.dot_dimension_numbers<[1], [0], [0], [1], [0, 0, 1, 1], [], []>} : vector<8x8xbf16>, vector<8x8xbf16>, vector<8x8xf32> -> vector<8x8xf32>
    %c0_15 = arith.constant 0 : index
    %c0_16 = arith.constant 0 : index
    %46 = vector.load %arg5[%c0_15, %c0_16] : memref<16x32xf32, #tpu.memory_space<vmem>>, vector<8x8xf32>
    tpu.vector_store %arg5[%c0_15, %c0_16], %45 {strides = array<i32>} : memref<16x32xf32, #tpu.memory_space<vmem>>, vector<8x8xf32>,
    %47 = vector.extract_strided_slice %21 {offsets = [0, 136], sizes = [8, 8], strides = [1, 1]} : vector<16x224xf32> to vector<8x8xf32>
    %48 = arith.truncf %47 : vector<8x8xf32> to vector<8x8xbf16>
    %49 = vector.extract_strided_slice %21 {offsets = [0, 168], sizes = [8, 8], strides = [1, 1]} : vector<16x224xf32> to vector<8x8xf32>
    %50 = arith.truncf %49 : vector<8x8xf32> to vector<8x8xbf16>
    %51 = vector.extract_strided_slice %21 {offsets = [0, 200], sizes = [8, 8], strides = [1, 1]} : vector<16x224xf32> to vector<8x8xf32>
    %52 = arith.truncf %51 : vector<8x8xf32> to vector<8x8xbf16>
    %cst_17 = arith.constant dense<0.000000e+00> : vector<8x8xf32>
    %53 = tpu.matmul %48, %50, %cst_17 {dimension_numbers = #tpu.dot_dimension_numbers<[1], [1], [0], [0], [0, 0, 1, 0], [], []>} : vector<8x8xbf16>, vector<8x8xbf16>, vector<8x8xf32> -> vector<8x8xf32>
    %cst_18 = arith.constant dense<0xFF800000> : vector<8xf32>
    %54 = vector.multi_reduction <maximumf>, %53, %cst_18 [1] : vector<8x8xf32> to vector<8xf32>
    %55 = vector.shape_cast %54 : vector<8xf32> to vector<8x1xf32>
    %56 = vector.broadcast %55 : vector<8x1xf32> to vector<8x8xf32>
    %57 = arith.subf %53, %56 : vector<8x8xf32>
    %58 = math.exp %57 : vector<8x8xf32>
    %cst_19 = arith.constant dense<0.000000e+00> : vector<8xf32>
    %59 = vector.multi_reduction <add>, %58, %cst_19 [1] : vector<8x8xf32> to vector<8xf32>
    %60 = vector.shape_cast %59 : vector<8xf32> to vector<8x1xf32>
    %61 = tpu.reciprocal %60 {approx = true} : vector<8x1xf32> -> vector<8x1xf32>
    %62 = vector.broadcast %61 : vector<8x1xf32> to vector<8x8xf32>
    %63 = arith.mulf %58, %62 : vector<8x8xf32>
    %64 = arith.truncf %63 : vector<8x8xf32> to vector<8x8xbf16>
    %cst_20 = arith.constant dense<0.000000e+00> : vector<8x8xf32>
    %65 = tpu.matmul %64, %52, %cst_20 {dimension_numbers = #tpu.dot_dimension_numbers<[1], [0], [0], [1], [0, 0, 1, 1], [], []>} : vector<8x8xbf16>, vector<8x8xbf16>, vector<8x8xf32> -> vector<8x8xf32>
    %c0_21 = arith.constant 0 : index
    %c8 = arith.constant 8 : index
    %66 = vector.load %arg5[%c0_21, %c8] : memref<16x32xf32, #tpu.memory_space<vmem>>, vector<8x8xf32>
    tpu.vector_store %arg5[%c0_21, %c8], %65 {strides = array<i32>} : memref<16x32xf32, #tpu.memory_space<vmem>>, vector<8x8xf32>,
    %67 = vector.extract_strided_slice %21 {offsets = [0, 144], sizes = [8, 8], strides = [1, 1]} : vector<16x224xf32> to vector<8x8xf32>
    %68 = arith.truncf %67 : vector<8x8xf32> to vector<8x8xbf16>
    %69 = vector.extract_strided_slice %21 {offsets = [0, 176], sizes = [8, 8], strides = [1, 1]} : vector<16x224xf32> to vector<8x8xf32>
    %70 = arith.truncf %69 : vector<8x8xf32> to vector<8x8xbf16>
    %71 = vector.extract_strided_slice %21 {offsets = [0, 208], sizes = [8, 8], strides = [1, 1]} : vector<16x224xf32> to vector<8x8xf32>
    %72 = arith.truncf %71 : vector<8x8xf32> to vector<8x8xbf16>
    %cst_22 = arith.constant dense<0.000000e+00> : vector<8x8xf32>
    %73 = tpu.matmul %68, %70, %cst_22 {dimension_numbers = #tpu.dot_dimension_numbers<[1], [1], [0], [0], [0, 0, 1, 0], [], []>} : vector<8x8xbf16>, vector<8x8xbf16>, vector<8x8xf32> -> vector<8x8xf32>
    %cst_23 = arith.constant dense<0xFF800000> : vector<8xf32>
    %74 = vector.multi_reduction <maximumf>, %73, %cst_23 [1] : vector<8x8xf32> to vector<8xf32>
    %75 = vector.shape_cast %74 : vector<8xf32> to vector<8x1xf32>
    %76 = vector.broadcast %75 : vector<8x1xf32> to vector<8x8xf32>
    %77 = arith.subf %73, %76 : vector<8x8xf32>
    %78 = math.exp %77 : vector<8x8xf32>
    %cst_24 = arith.constant dense<0.000000e+00> : vector<8xf32>
    %79 = vector.multi_reduction <add>, %78, %cst_24 [1] : vector<8x8xf32> to vector<8xf32>
    %80 = vector.shape_cast %79 : vector<8xf32> to vector<8x1xf32>
    %81 = tpu.reciprocal %80 {approx = true} : vector<8x1xf32> -> vector<8x1xf32>
    %82 = vector.broadcast %81 : vector<8x1xf32> to vector<8x8xf32>
    %83 = arith.mulf %78, %82 : vector<8x8xf32>
    %84 = arith.truncf %83 : vector<8x8xf32> to vector<8x8xbf16>
    %cst_25 = arith.constant dense<0.000000e+00> : vector<8x8xf32>
    %85 = tpu.matmul %84, %72, %cst_25 {dimension_numbers = #tpu.dot_dimension_numbers<[1], [0], [0], [1], [0, 0, 1, 1], [], []>} : vector<8x8xbf16>, vector<8x8xbf16>, vector<8x8xf32> -> vector<8x8xf32>
    %c0_26 = arith.constant 0 : index
    %c16 = arith.constant 16 : index
    %86 = vector.load %arg5[%c0_26, %c16] : memref<16x32xf32, #tpu.memory_space<vmem>>, vector<8x8xf32>
    tpu.vector_store %arg5[%c0_26, %c16], %85 {strides = array<i32>} : memref<16x32xf32, #tpu.memory_space<vmem>>, vector<8x8xf32>,
    %87 = vector.extract_strided_slice %21 {offsets = [0, 152], sizes = [8, 8], strides = [1, 1]} : vector<16x224xf32> to vector<8x8xf32>
    %88 = arith.truncf %87 : vector<8x8xf32> to vector<8x8xbf16>
    %89 = vector.extract_strided_slice %21 {offsets = [0, 184], sizes = [8, 8], strides = [1, 1]} : vector<16x224xf32> to vector<8x8xf32>
    %90 = arith.truncf %89 : vector<8x8xf32> to vector<8x8xbf16>
    %91 = vector.extract_strided_slice %21 {offsets = [0, 216], sizes = [8, 8], strides = [1, 1]} : vector<16x224xf32> to vector<8x8xf32>
    %92 = arith.truncf %91 : vector<8x8xf32> to vector<8x8xbf16>
    %cst_27 = arith.constant dense<0.000000e+00> : vector<8x8xf32>
    %93 = tpu.matmul %88, %90, %cst_27 {dimension_numbers = #tpu.dot_dimension_numbers<[1], [1], [0], [0], [0, 0, 1, 0], [], []>} : vector<8x8xbf16>, vector<8x8xbf16>, vector<8x8xf32> -> vector<8x8xf32>
    %cst_28 = arith.constant dense<0xFF800000> : vector<8xf32>
    %94 = vector.multi_reduction <maximumf>, %93, %cst_28 [1] : vector<8x8xf32> to vector<8xf32>
    %95 = vector.shape_cast %94 : vector<8xf32> to vector<8x1xf32>
    %96 = vector.broadcast %95 : vector<8x1xf32> to vector<8x8xf32>
    %97 = arith.subf %93, %96 : vector<8x8xf32>
    %98 = math.exp %97 : vector<8x8xf32>
    %cst_29 = arith.constant dense<0.000000e+00> : vector<8xf32>
    %99 = vector.multi_reduction <add>, %98, %cst_29 [1] : vector<8x8xf32> to vector<8xf32>
    %100 = vector.shape_cast %99 : vector<8xf32> to vector<8x1xf32>
    %101 = tpu.reciprocal %100 {approx = true} : vector<8x1xf32> -> vector<8x1xf32>
    %102 = vector.broadcast %101 : vector<8x1xf32> to vector<8x8xf32>
    %103 = arith.mulf %98, %102 : vector<8x8xf32>
    %104 = arith.truncf %103 : vector<8x8xf32> to vector<8x8xbf16>
    %cst_30 = arith.constant dense<0.000000e+00> : vector<8x8xf32>
    %105 = tpu.matmul %104, %92, %cst_30 {dimension_numbers = #tpu.dot_dimension_numbers<[1], [0], [0], [1], [0, 0, 1, 1], [], []>} : vector<8x8xbf16>, vector<8x8xbf16>, vector<8x8xf32> -> vector<8x8xf32>
    %c0_31 = arith.constant 0 : index
    %c24 = arith.constant 24 : index
    %106 = vector.load %arg5[%c0_31, %c24] : memref<16x32xf32, #tpu.memory_space<vmem>>, vector<8x8xf32>
    tpu.vector_store %arg5[%c0_31, %c24], %105 {strides = array<i32>} : memref<16x32xf32, #tpu.memory_space<vmem>>, vector<8x8xf32>,
    %107 = vector.extract_strided_slice %21 {offsets = [8, 128], sizes = [8, 8], strides = [1, 1]} : vector<16x224xf32> to vector<8x8xf32>
    %108 = arith.truncf %107 : vector<8x8xf32> to vector<8x8xbf16>
    %109 = vector.extract_strided_slice %21 {offsets = [8, 160], sizes = [8, 8], strides = [1, 1]} : vector<16x224xf32> to vector<8x8xf32>
    %110 = arith.truncf %109 : vector<8x8xf32> to vector<8x8xbf16>
    %111 = vector.extract_strided_slice %21 {offsets = [8, 192], sizes = [8, 8], strides = [1, 1]} : vector<16x224xf32> to vector<8x8xf32>
    %112 = arith.truncf %111 : vector<8x8xf32> to vector<8x8xbf16>
    %cst_32 = arith.constant dense<0.000000e+00> : vector<8x8xf32>
    %113 = tpu.matmul %108, %110, %cst_32 {dimension_numbers = #tpu.dot_dimension_numbers<[1], [1], [0], [0], [0, 0, 1, 0], [], []>} : vector<8x8xbf16>, vector<8x8xbf16>, vector<8x8xf32> -> vector<8x8xf32>
    %cst_33 = arith.constant dense<0xFF800000> : vector<8xf32>
    %114 = vector.multi_reduction <maximumf>, %113, %cst_33 [1] : vector<8x8xf32> to vector<8xf32>
    %115 = vector.shape_cast %114 : vector<8xf32> to vector<8x1xf32>
    %116 = vector.broadcast %115 : vector<8x1xf32> to vector<8x8xf32>
    %117 = arith.subf %113, %116 : vector<8x8xf32>
    %118 = math.exp %117 : vector<8x8xf32>
    %cst_34 = arith.constant dense<0.000000e+00> : vector<8xf32>
    %119 = vector.multi_reduction <add>, %118, %cst_34 [1] : vector<8x8xf32> to vector<8xf32>
    %120 = vector.shape_cast %119 : vector<8xf32> to vector<8x1xf32>
    %121 = tpu.reciprocal %120 {approx = true} : vector<8x1xf32> -> vector<8x1xf32>
    %122 = vector.broadcast %121 : vector<8x1xf32> to vector<8x8xf32>
    %123 = arith.mulf %118, %122 : vector<8x8xf32>
    %124 = arith.truncf %123 : vector<8x8xf32> to vector<8x8xbf16>
    %cst_35 = arith.constant dense<0.000000e+00> : vector<8x8xf32>
    %125 = tpu.matmul %124, %112, %cst_35 {dimension_numbers = #tpu.dot_dimension_numbers<[1], [0], [0], [1], [0, 0, 1, 1], [], []>} : vector<8x8xbf16>, vector<8x8xbf16>, vector<8x8xf32> -> vector<8x8xf32>
    %c8_36 = arith.constant 8 : index
    %c0_37 = arith.constant 0 : index
    %126 = vector.load %arg5[%c8_36, %c0_37] : memref<16x32xf32, #tpu.memory_space<vmem>>, vector<8x8xf32>
    tpu.vector_store %arg5[%c8_36, %c0_37], %125 {strides = array<i32>} : memref<16x32xf32, #tpu.memory_space<vmem>>, vector<8x8xf32>,
    %127 = vector.extract_strided_slice %21 {offsets = [8, 136], sizes = [8, 8], strides = [1, 1]} : vector<16x224xf32> to vector<8x8xf32>
    %128 = arith.truncf %127 : vector<8x8xf32> to vector<8x8xbf16>
    %129 = vector.extract_strided_slice %21 {offsets = [8, 168], sizes = [8, 8], strides = [1, 1]} : vector<16x224xf32> to vector<8x8xf32>
    %130 = arith.truncf %129 : vector<8x8xf32> to vector<8x8xbf16>
    %131 = vector.extract_strided_slice %21 {offsets = [8, 200], sizes = [8, 8], strides = [1, 1]} : vector<16x224xf32> to vector<8x8xf32>
    %132 = arith.truncf %131 : vector<8x8xf32> to vector<8x8xbf16>
    %cst_38 = arith.constant dense<0.000000e+00> : vector<8x8xf32>
    %133 = tpu.matmul %128, %130, %cst_38 {dimension_numbers = #tpu.dot_dimension_numbers<[1], [1], [0], [0], [0, 0, 1, 0], [], []>} : vector<8x8xbf16>, vector<8x8xbf16>, vector<8x8xf32> -> vector<8x8xf32>
    %cst_39 = arith.constant dense<0xFF800000> : vector<8xf32>
    %134 = vector.multi_reduction <maximumf>, %133, %cst_39 [1] : vector<8x8xf32> to vector<8xf32>
    %135 = vector.shape_cast %134 : vector<8xf32> to vector<8x1xf32>
    %136 = vector.broadcast %135 : vector<8x1xf32> to vector<8x8xf32>
    %137 = arith.subf %133, %136 : vector<8x8xf32>
    %138 = math.exp %137 : vector<8x8xf32>
    %cst_40 = arith.constant dense<0.000000e+00> : vector<8xf32>
    %139 = vector.multi_reduction <add>, %138, %cst_40 [1] : vector<8x8xf32> to vector<8xf32>
    %140 = vector.shape_cast %139 : vector<8xf32> to vector<8x1xf32>
    %141 = tpu.reciprocal %140 {approx = true} : vector<8x1xf32> -> vector<8x1xf32>
    %142 = vector.broadcast %141 : vector<8x1xf32> to vector<8x8xf32>
    %143 = arith.mulf %138, %142 : vector<8x8xf32>
    %144 = arith.truncf %143 : vector<8x8xf32> to vector<8x8xbf16>
    %cst_41 = arith.constant dense<0.000000e+00> : vector<8x8xf32>
    %145 = tpu.matmul %144, %132, %cst_41 {dimension_numbers = #tpu.dot_dimension_numbers<[1], [0], [0], [1], [0, 0, 1, 1], [], []>} : vector<8x8xbf16>, vector<8x8xbf16>, vector<8x8xf32> -> vector<8x8xf32>
    %c8_42 = arith.constant 8 : index
    %c8_43 = arith.constant 8 : index
    %146 = vector.load %arg5[%c8_42, %c8_43] : memref<16x32xf32, #tpu.memory_space<vmem>>, vector<8x8xf32>
    tpu.vector_store %arg5[%c8_42, %c8_43], %145 {strides = array<i32>} : memref<16x32xf32, #tpu.memory_space<vmem>>, vector<8x8xf32>,
    %147 = vector.extract_strided_slice %21 {offsets = [8, 144], sizes = [8, 8], strides = [1, 1]} : vector<16x224xf32> to vector<8x8xf32>
    %148 = arith.truncf %147 : vector<8x8xf32> to vector<8x8xbf16>
    %149 = vector.extract_strided_slice %21 {offsets = [8, 176], sizes = [8, 8], strides = [1, 1]} : vector<16x224xf32> to vector<8x8xf32>
    %150 = arith.truncf %149 : vector<8x8xf32> to vector<8x8xbf16>
    %151 = vector.extract_strided_slice %21 {offsets = [8, 208], sizes = [8, 8], strides = [1, 1]} : vector<16x224xf32> to vector<8x8xf32>
    %152 = arith.truncf %151 : vector<8x8xf32> to vector<8x8xbf16>
    %cst_44 = arith.constant dense<0.000000e+00> : vector<8x8xf32>
    %153 = tpu.matmul %148, %150, %cst_44 {dimension_numbers = #tpu.dot_dimension_numbers<[1], [1], [0], [0], [0, 0, 1, 0], [], []>} : vector<8x8xbf16>, vector<8x8xbf16>, vector<8x8xf32> -> vector<8x8xf32>
    %cst_45 = arith.constant dense<0xFF800000> : vector<8xf32>
    %154 = vector.multi_reduction <maximumf>, %153, %cst_45 [1] : vector<8x8xf32> to vector<8xf32>
    %155 = vector.shape_cast %154 : vector<8xf32> to vector<8x1xf32>
    %156 = vector.broadcast %155 : vector<8x1xf32> to vector<8x8xf32>
    %157 = arith.subf %153, %156 : vector<8x8xf32>
    %158 = math.exp %157 : vector<8x8xf32>
    %cst_46 = arith.constant dense<0.000000e+00> : vector<8xf32>
    %159 = vector.multi_reduction <add>, %158, %cst_46 [1] : vector<8x8xf32> to vector<8xf32>
    %160 = vector.shape_cast %159 : vector<8xf32> to vector<8x1xf32>
    %161 = tpu.reciprocal %160 {approx = true} : vector<8x1xf32> -> vector<8x1xf32>
    %162 = vector.broadcast %161 : vector<8x1xf32> to vector<8x8xf32>
    %163 = arith.mulf %158, %162 : vector<8x8xf32>
    %164 = arith.truncf %163 : vector<8x8xf32> to vector<8x8xbf16>
    %cst_47 = arith.constant dense<0.000000e+00> : vector<8x8xf32>
    %165 = tpu.matmul %164, %152, %cst_47 {dimension_numbers = #tpu.dot_dimension_numbers<[1], [0], [0], [1], [0, 0, 1, 1], [], []>} : vector<8x8xbf16>, vector<8x8xbf16>, vector<8x8xf32> -> vector<8x8xf32>
    %c8_48 = arith.constant 8 : index
    %c16_49 = arith.constant 16 : index
    %166 = vector.load %arg5[%c8_48, %c16_49] : memref<16x32xf32, #tpu.memory_space<vmem>>, vector<8x8xf32>
    tpu.vector_store %arg5[%c8_48, %c16_49], %165 {strides = array<i32>} : memref<16x32xf32, #tpu.memory_space<vmem>>, vector<8x8xf32>,
    %167 = vector.extract_strided_slice %21 {offsets = [8, 152], sizes = [8, 8], strides = [1, 1]} : vector<16x224xf32> to vector<8x8xf32>
    %168 = arith.truncf %167 : vector<8x8xf32> to vector<8x8xbf16>
    %169 = vector.extract_strided_slice %21 {offsets = [8, 184], sizes = [8, 8], strides = [1, 1]} : vector<16x224xf32> to vector<8x8xf32>
    %170 = arith.truncf %169 : vector<8x8xf32> to vector<8x8xbf16>
    %171 = vector.extract_strided_slice %21 {offsets = [8, 216], sizes = [8, 8], strides = [1, 1]} : vector<16x224xf32> to vector<8x8xf32>
    %172 = arith.truncf %171 : vector<8x8xf32> to vector<8x8xbf16>
    %cst_50 = arith.constant dense<0.000000e+00> : vector<8x8xf32>
    %173 = tpu.matmul %168, %170, %cst_50 {dimension_numbers = #tpu.dot_dimension_numbers<[1], [1], [0], [0], [0, 0, 1, 0], [], []>} : vector<8x8xbf16>, vector<8x8xbf16>, vector<8x8xf32> -> vector<8x8xf32>
    %cst_51 = arith.constant dense<0xFF800000> : vector<8xf32>
    %174 = vector.multi_reduction <maximumf>, %173, %cst_51 [1] : vector<8x8xf32> to vector<8xf32>
    %175 = vector.shape_cast %174 : vector<8xf32> to vector<8x1xf32>
    %176 = vector.broadcast %175 : vector<8x1xf32> to vector<8x8xf32>
    %177 = arith.subf %173, %176 : vector<8x8xf32>
    %178 = math.exp %177 : vector<8x8xf32>
    %cst_52 = arith.constant dense<0.000000e+00> : vector<8xf32>
    %179 = vector.multi_reduction <add>, %178, %cst_52 [1] : vector<8x8xf32> to vector<8xf32>
    %180 = vector.shape_cast %179 : vector<8xf32> to vector<8x1xf32>
    %181 = tpu.reciprocal %180 {approx = true} : vector<8x1xf32> -> vector<8x1xf32>
    %182 = vector.broadcast %181 : vector<8x1xf32> to vector<8x8xf32>
    %183 = arith.mulf %178, %182 : vector<8x8xf32>
    %184 = arith.truncf %183 : vector<8x8xf32> to vector<8x8xbf16>
    %cst_53 = arith.constant dense<0.000000e+00> : vector<8x8xf32>
    %185 = tpu.matmul %184, %172, %cst_53 {dimension_numbers = #tpu.dot_dimension_numbers<[1], [0], [0], [1], [0, 0, 1, 1], [], []>} : vector<8x8xbf16>, vector<8x8xbf16>, vector<8x8xf32> -> vector<8x8xf32>
    %c8_54 = arith.constant 8 : index
    %c24_55 = arith.constant 24 : index
    %186 = vector.load %arg5[%c8_54, %c24_55] : memref<16x32xf32, #tpu.memory_space<vmem>>, vector<8x8xf32>
    tpu.vector_store %arg5[%c8_54, %c24_55], %185 {strides = array<i32>} : memref<16x32xf32, #tpu.memory_space<vmem>>, vector<8x8xf32>,
    %c0_56 = arith.constant 0 : index
    %c0_57 = arith.constant 0 : index
    %187 = vector.load %arg5[%c0_56, %c0_57] : memref<16x32xf32, #tpu.memory_space<vmem>>, vector<16x32xf32>
    %188 = arith.truncf %187 : vector<16x32xf32> to vector<16x32xbf16>
    %c0_58 = arith.constant 0 : index
    %c0_59 = arith.constant 0 : index
    %189 = vector.load %arg3[%c0_58, %c0_59] : memref<32x32xbf16, #tpu.memory_space<vmem>>, vector<32x32xbf16>
    %cst_60 = arith.constant dense<0.000000e+00> : vector<16x32xf32>
    %190 = tpu.matmul %188, %189, %cst_60 {dimension_numbers = #tpu.dot_dimension_numbers<[1], [0], [0], [1], [0, 0, 1, 1], [], []>} : vector<16x32xbf16>, vector<32x32xbf16>, vector<16x32xf32> -> vector<16x32xf32>
    %191 = arith.addf %26, %190 : vector<16x32xf32>
    %c0_61 = arith.constant 0 : index
    %c0_62 = arith.constant 0 : index
    %192 = vector.load %arg4[%c0_61, %c0_62] : memref<16x32xf32, #tpu.memory_space<vmem>>, vector<16x32xf32>
    tpu.vector_store %arg4[%c0_61, %c0_62], %191 {strides = array<i32>} : memref<16x32xf32, #tpu.memory_space<vmem>>, vector<16x32xf32>,
    return
  }
}

</mosaic_0001>

<bundles_post_ra>
// kernel: tpu_custom_call.1
= control target key start
LH: loop header
LB: loop body
LE: loop exit
PB: predicated region body
PF: predicated region fallthrough
CT: control target
= control target key end

     0   :  { %vm21_vm0 = vcmask 261120   ;;  %s1153_s0 = inlined_call_operand.vmem [shape: f32[16,32], index: 0, kind: input, shape index: {}]   ;;  %s1154_s1 = inlined_call_operand.vmem [shape: bf16[32,224], index: 1, kind: input, shape index: {}]   ;;  %s1155_s2 = inlined_call_operand.vmem [shape: bf16[128,32], index: 2, kind: input, shape index: {}]   ;;  %s1156_s3 = inlined_call_operand.vmem [shape: bf16[32,32], index: 3, kind: input, shape index: {}]   ;;  %s1157_s4 = inlined_call_operand.hbm [shape: f32[16,32], index: 4, kind: output, shape index: {}]  }
   0x1   :  { %v970_v0 = vld [vmem:[%s1153_s0] sm:$0xff] }
   0x2   :  { %9 = vsyncpa [#allocation4], 0  ;;  %v22_v1 = vsel %vm21_vm0, %v970_v0, 0.0  ;;  %v37_v2 = vmul.f32 %v970_v0, %v970_v0  ;;  %v979_v3 = vld [vmem:[%s1153_s0 + $0x8] sm:$0xff]  ;;  %v925_v8 = vmov 32.0   ;;  %v841_v34 = vld [vmem:[%s1155_s2 + $0x38] sm:$0xff] }
   0x3   :  { %23 = vadd.xlane.f32.xlu0 %v22_v1  ;;  %v38_v5 = vmul.f32 %v979_v3, %v979_v3  ;;  %v25_v6 = vsel %vm21_vm0, %v979_v3, 0.0  ;;  %861 = vrcp.f32 %v925_v8  ;;  %v765_v14 = vld [vmem:[%s1154_s1 + $0x10] sm:$0xf]  ;;  %v833_v15 = vld [vmem:[%s1154_s1 + $0x14] sm:$0xf0]  ;;  %198 = vmatpush.bf16.msra.mxu2 %v841_v34  ;;  %v839_v42 = vld [vmem:[%s1155_s2 + $0x28] sm:$0xff] }
   0x4   :  { %v39_v4 = vsel %vm21_vm0, %v37_v2, 0.0  ;;  %v832_v16 = vld [vmem:[%s1154_s1 + $0x14] sm:$0xf]  ;;  %v766_v18 = vor.u32 %v833_v15, %v765_v14  ;;  %v767_v19 = vld [vmem:[%s1154_s1 + $0x18] sm:$0xf0]  ;;  %v838_v46 = vld [vmem:[%s1155_s2 + $0x20] sm:$0xff] }
   0x5   :  { %40 = vadd.xlane.f32.xlu1 %v39_v4  ;;  %v42_v7 = vsel %vm21_vm0, %v38_v5, 0.0  ;;  %v757_v20 = vld [vmem:[%s1154_s1] sm:$0xf]  ;;  %v831_v21 = vld [vmem:[%s1154_s1 + $0x4] sm:$0xf0]  ;;  %v770_v22 = vor.u32 %v832_v16, %v767_v19  ;;  %v840_v37 = vld [vmem:[%s1155_s2 + $0x30] sm:$0xff] }
   0x6   :  { %v830_v23 = vld [vmem:[%s1154_s1 + $0x4] sm:$0xf]  ;;  %v759_v24 = vld [vmem:[%s1154_s1 + $0x8] sm:$0xf0]  ;;  %111 = vmatpush.bf16.msra.mxu0 %v766_v18  ;;  %v758_v26 = vor.u32 %v831_v21, %v757_v20  ;;  %v837_v49 = vld [vmem:[%s1155_s2 + $0x18] sm:$0xff]  ;;  %s926_s22 = smov 120  }
   0x7   :  { %125 = vmatpush.bf16.msra.mxu1 %v770_v22  ;;  %v762_v28 = vor.u32 %v830_v23, %v759_v24  ;;  %199 = vmatpush.bf16.msra.mxu2 %v840_v37  ;;  %v836_v2 = vld [vmem:[%s1155_s2 + $0x10] sm:$0xff]  ;;  %v835_v4 = vld [vmem:[%s1155_s2 + $0x8] sm:$0xff]  ;;  %v834_v5 = vld [vmem:[%s1155_s2] sm:$0xff]  ;;  %s927_s23 = smov 88   ;;  %s928_s24 = smov 96   ;;  %vm216_vm8 = vcmask 64512  }
   0x8   :  { %s929_s2 = smov 72   ;;  %s930_s25 = smov 56   ;;  %vm253_vm9 = vcmask 1043456   ;;  %vm331_vm10 = vcmask 130112   ;;  %vm393_vm11 = vcmask 195712   ;;  %vm455_vm12 = vcmask 261312  }
   0x9   :  { %v862_v9 = vpop.eup %861  ;;  %s931_s26 = smov 64   ;;  %s932_s27 = smov 104  }
   0xa   :  { %v29_v10 = vmul.f32 32.0, %v862_v9  ;;  %vm33_vm1 = vweird.f32 %v862_v9  ;;  %112 = vmatpush.bf16.msra.mxu0 %v758_v26  ;;  %s933_s28 = smov 80   ;;  %s934_s29 = smov 112  }
   0xb   :  { %26 = vadd.xlane.f32.xlu0 %v25_v6  ;;  %126 = vmatpush.bf16.msra.mxu1 %v762_v28  ;;  %s935_s30 = smov 40   ;;  %s936_s5 = smov 48  }
   0xc   :  { %v30_v11 = vsub.f32 1.0, %v29_v10  ;;  %200 = vmatpush.bf16.msra.mxu2 %v839_v42  ;;  %s937_s6 = smov 8   ;;  %s938_s7 = smov 16  }
   0xd   :  { %43 = vadd.xlane.f32.xlu1 %v42_v7  ;;  %s939_s8 = smov 24   ;;  %s940_s12 = smov [#allocation3]  }
   0xe   :  { %v31_v12 = vmul.f32 %v862_v9, %v30_v11  ;;  %s741_s13 = sshll.u32 %s940_s12, 4  ;;  %s743_s15 = sshll.u32 %s1157_s4, 4  ;;  %s742_s13 = int_to_ptr.vmem [resolvable:$true] %s741_s13  ;;  %s744_s15 = int_to_ptr.hbm [resolvable:$true] %s743_s15 }
   0xf   :  { %s941_s16 = smov 128  }
  0x10   :  { %v32_v13 = vadd.f32 %v862_v9, %v31_v12  ;;  %201 = vmatpush.bf16.msra.mxu2 %v838_v46 }
  0x12   :  { %v34_v17 = vsel %vm33_vm1, %v862_v9, %v32_v13 }
  0x14   :  { %202 = vmatpush.bf16.msra.mxu2 %v837_v49 }
  0x18   :  { %203 = vmatpush.bf16.msra.mxu2 %v836_v2 }
  0x1c   :  { %204 = vmatpush.bf16.msra.mxu2 %v835_v4 }
  0x20   :  { %205 = vmatpush.bf16.msra.mxu2 %v834_v5 }
  0x76   :  { %v24_v25 = vpop.xlane.xlu0 %23 }
  0x77   :  { %v35_v27 = vmul.f32 %v34_v17, %v24_v25 }
  0x78   :  { %v41_v29 = vpop.xlane.xlu1 %40 }
  0x79   :  { %v49_v30 = vmul.f32 %v35_v27, %v35_v27  ;;  %v45_v31 = vmul.f32 %v41_v29, %v34_v17  ;;  %v47_v59 = vsub.f32 %v970_v0, %v35_v27 }
  0x7b   :  { %v51_v32 = vsub.f32 %v45_v31, %v49_v30 }
  0x7d   :  { %v53_v33 = vadd.f32 1e-05, %v51_v32 }
  0x7e   :  { %v27_v35 = vpop.xlane.xlu0 %26 }
  0x7f   :  { %863 = vrsqrt.f32 %v53_v33  ;;  %v36_v36 = vmul.f32 %v34_v17, %v27_v35  ;;  %vm61_vm3 = vweird.f32 %v53_v33 }
  0x80   :  { %v44_v38 = vpop.xlane.xlu1 %43 }
  0x81   :  { %v50_v39 = vmul.f32 %v36_v36, %v36_v36  ;;  %v46_v40 = vmul.f32 %v44_v38, %v34_v17  ;;  %v48_v60 = vsub.f32 %v979_v3, %v36_v36 }
  0x83   :  { %v52_v41 = vsub.f32 %v46_v40, %v50_v39 }
  0x85   :  { %v864_v43 = vpop.eup %863  ;;  %v54_v44 = vadd.f32 1e-05, %v52_v41 }
  0x86   :  { %v56_v45 = vmul.f32 %v864_v43, %v53_v33  ;;  %vm62_vm2 = vweird.f32 %v864_v43 }
  0x87   :  { %865 = vrsqrt.f32 %v54_v44  ;;  %vm63_vm5 = vmor %vm61_vm3, %vm62_vm2  ;;  %vm71_vm6 = vweird.f32 %v54_v44 }
  0x88   :  { %v57_v47 = vmul.f32 %v864_v43, %v56_v45 }
  0x8a   :  { %v58_v48 = vmul.f32 0.5, %v57_v47 }
  0x8c   :  { %v59_v51 = vsub.f32 1.5, %v58_v48 }
  0x8d   :  { %v866_v50 = vpop.eup %865 }
  0x8e   :  { %v66_v52 = vmul.f32 %v866_v50, %v54_v44  ;;  %v60_v55 = vmul.f32 %v864_v43, %v59_v51  ;;  %vm72_vm4 = vweird.f32 %v866_v50 }
  0x8f   :  { %vm73_vm7 = vmor %vm71_vm6, %vm72_vm4 }
  0x90   :  { %v67_v53 = vmul.f32 %v866_v50, %v66_v52  ;;  %v64_v57 = vsel %vm63_vm5, %v864_v43, %v60_v55 }
  0x91   :  { %v75_v62 = vmul.f32 %v64_v57, %v47_v59 }
  0x92   :  { %v68_v54 = vmul.f32 0.5, %v67_v53 }
  0x94   :  { %v69_v56 = vsub.f32 1.5, %v68_v54 }
  0x96   :  { %v70_v58 = vmul.f32 %v866_v50, %v69_v56 }
  0x98   :  { %v74_v61 = vsel %vm73_vm7, %v866_v50, %v70_v58 }
  0x99   :  { %v76_v63 = vmul.f32 %v74_v61, %v48_v60 }
  0x9b   :  { %v77_v1 = vpack.c.bf16 %v76_v63, %v75_v62 }
  0x9d   :  { %771 = vmatmul.msk.bf16.vlgmr.msra.gmra.mxu0 %vm21_vm0, %v77_v1  ;;  %772 = vmatmul.msk.bf16.vlgmr.msra.gmra.mxu1 %vm21_vm0, %v77_v1 }
 0x11a   :  { %v114_v6 = vpop.f32.mrf.mxu0  ;;  %v128_v7 = vpop.f32.mrf.mxu1 }
 0x11b   :  { %v1039_v8 = vpack.c.bf16 %v128_v7, %v128_v7 }
 0x11d   :  { %271 = vrot.lane.b32.xlu0 %v1039_v8, %s926_s22  ;;  %273 = vrot.lane.b32.xlu2 %v1039_v8, %s927_s23 }
 0x122   :  { %v116_v9 = vpop.f32.mrf.mxu0  ;;  %v130_v16 = vpop.f32.mrf.mxu1 }
 0x123   :  { %v133_v10 = vpack.c.bf16 %v116_v9, %v114_v6  ;;  %v1057_v23 = vpack.c.bf16 %v130_v16, %v130_v16 }
 0x125   :  { %214 = vrot.lane.b32.xlu2 %v1039_v8, %s928_s24  ;;  %206 = vmatmul.bf16.vlgmr.msra.gmra.mxu2 %v133_v10 }
 0x177   :  { %v274_v11 = vpop.permute.xlu2 %273 }
 0x178   :  { %v279_v12 = vsel %vm216_vm8, %v274_v11, 0 }
 0x179   :  { %288 = vmatpush.bf16.xpose.msrb.mxu1 %v279_v12 }
 0x17f   :  { %v215_v13 = vpop.permute.xlu2 %214 }
 0x180   :  { %v221_v14 = vsel %vm216_vm8, %v215_v13, 0 }
 0x181   :  { %230 = vmatpush.bf16.xpose.msra.mxu3 %v221_v14 }
 0x188   :  { %805 = vmatmul.msk.bf16.vlgmr.msra.gmra.mxu3 %vm216_vm8, %v1039_v8 }
 0x18f   :  { %v272_v15 = vpop.permute.xlu0 %271 }
 0x190   :  { %807 = vmatmul.msk.bf16.vlgmr.msrb.gmra.mxu1 %vm216_vm8, %v272_v15 }
 0x20b   :  { %v232_v17 = vpop.f32.mrf.mxu3 }
 0x20c   :  { %v236_v18 = vsel %vm216_vm8, %v232_v17, -inf }
 0x20d   :  { %237 = vmax.xlane.f32.xlu2 %v236_v18  ;;  %v290_v19 = vpop.f32.mrf.mxu1 }
 0x20e   :  { %v294_v20 = vsel %vm216_vm8, %v290_v19, -inf }
 0x20f   :  { %295 = vmax.xlane.f32.xlu1 %v294_v20 }
 0x213   :  { %v234_v21 = vpop.f32.mrf.mxu3 }
 0x215   :  { %v292_v22 = vpop.f32.mrf.mxu1 }
 0x225   :  { %397 = vrot.lane.b32.xlu2 %v1039_v8, %s929_s2 }
 0x228   :  { %306 = vrot.lane.b32.xlu1 %v1039_v8, %s930_s25 }
 0x22d   :  { %514 = vrot.lane.b32.xlu2 %v1057_v23, %s926_s22 }
 0x230   :  { %248 = vrot.lane.b32.xlu1 %v1039_v8, %s931_s26 }
 0x235   :  { %638 = vrot.lane.b32.xlu2 %v1057_v23, %s929_s2 }
 0x238   :  { %395 = vrot.lane.b32.xlu1 %v1039_v8, %s932_s27 }
 0x23d   :  { %577 = vrot.lane.b32.xlu2 %v1057_v23, %s933_s28 }
 0x240   :  { %335 = vrot.lane.b32.xlu1 %v1039_v8, %s933_s28 }
 0x280   :  { %v238_v24 = vpop.xlane.xlu2 %237 }
 0x281   :  { %v239_v25 = vsub.f32 %v232_v17, %v238_v24 }
 0x282   :  { %v296_v26 = vpop.xlane.xlu1 %295 }
 0x283   :  { %v240_v27 = vmul.f32 1.442695, %v239_v25  ;;  %v297_v28 = vsub.f32 %v290_v19, %v296_v26 }
 0x285   :  { %867 = vpow2.f32 %v240_v27  ;;  %v298_v29 = vmul.f32 1.442695, %v297_v28 }
 0x287   :  { %869 = vpow2.f32 %v298_v29 }
 0x288   :  { %v398_v34 = vpop.permute.xlu2 %397 }
 0x289   :  { %v403_v37 = vsel %vm216_vm8, %v398_v34, 0 }
 0x28b   :  { %v868_v30 = vpop.eup %867 }
 0x28c   :  { %v242_v31 = vsel %vm216_vm8, %v868_v30, 0.0 }
 0x28d   :  { %v870_v32 = vpop.eup %869  ;;  %243 = vadd.xlane.f32.xlu0 %v242_v31 }
 0x28e   :  { %v300_v33 = vsel %vm216_vm8, %v870_v32, 0.0 }
 0x28f   :  { %301 = vadd.xlane.f32.xlu1 %v300_v33 }
 0x290   :  { %v515_v51 = vpop.permute.xlu2 %514 }
 0x298   :  { %v639_v54 = vpop.permute.xlu2 %638 }
 0x299   :  { %v644_v57 = vsel %vm216_vm8, %v639_v54, 0 }
 0x29a   :  { %v307_v35 = vpop.permute.xlu1 %306 }
 0x29b   :  { %v312_v36 = vsel %vm253_vm9, %v307_v35, 0 }
 0x29c   :  { %321 = vmatpush.bf16.msrb.mxu3 %v312_v36 }
 0x2a0   :  { %412 = vmatpush.bf16.xpose.msra.mxu3 %v403_v37  ;;  %v578_v58 = vpop.permute.xlu2 %577 }
 0x2a1   :  { %516 = vrot.lane.b32.xlu0 %v1057_v23, %s927_s23  ;;  %v583_v62 = vsel %vm216_vm8, %v578_v58, 0 }
 0x2a2   :  { %v249_v38 = vpop.permute.xlu1 %248 }
 0x2a3   :  { %v255_v39 = vsel %vm253_vm9, %v249_v38, 0 }
 0x2a4   :  { %264 = vmatpush.bf16.msrb.mxu0 %v255_v39 }
 0x2a8   :  { %333 = vrot.lane.b32.xlu1 %v1039_v8, %s934_s29 }
 0x2a9   :  { %575 = vrot.lane.b32.xlu0 %v1057_v23, %s934_s29 }
 0x2aa   :  { %v396_v40 = vpop.permute.xlu1 %395 }
 0x2b0   :  { %459 = vrot.lane.b32.xlu1 %v1057_v23, %s928_s24 }
 0x2b1   :  { %430 = vrot.lane.b32.xlu0 %v1039_v8, %s935_s30 }
 0x2b2   :  { %v336_v41 = vpop.permute.xlu1 %335 }
 0x2b3   :  { %v341_v42 = vsel %vm216_vm8, %v336_v41, 0 }
 0x2b4   :  { %350 = vmatpush.bf16.xpose.msra.mxu0 %v341_v42 }
 0x2b8   :  { %636 = vrot.lane.b32.xlu1 %v1057_v23, %s932_s27 }
 0x300   :  { %v244_v43 = vpop.xlane.xlu0 %243 }
 0x301   :  { %871 = vrcp.f32 %v244_v43 }
 0x302   :  { %v302_v44 = vpop.xlane.xlu1 %301 }
 0x303   :  { %873 = vrcp.f32 %v302_v44 }
 0x307   :  { %v872_v45 = vpop.eup %871 }
 0x308   :  { %v246_v46 = vmul.f32 %v872_v45, %v868_v30 }
 0x309   :  { %v874_v47 = vpop.eup %873 }
 0x30a   :  { %v304_v48 = vmul.f32 %v874_v47, %v870_v32  ;;  %v247_v49 = vpack.c.bf16 %v246_v46, %v246_v46 }
 0x30c   :  { %806 = vmatmul.msk.bf16.vlgmr.msrb.gmra.mxu0 %vm216_vm8, %v247_v49  ;;  %v305_v50 = vpack.c.bf16 %v304_v48, %v304_v48 }
 0x30e   :  { %808 = vmatmul.msk.bf16.vlgmr.msrb.gmra.mxu3 %vm216_vm8, %v305_v50 }
 0x313   :  { %v517_v52 = vpop.permute.xlu0 %516 }
 0x314   :  { %v522_v53 = vsel %vm216_vm8, %v517_v52, 0 }
 0x315   :  { %531 = vmatpush.bf16.xpose.msrb.mxu3 %v522_v53 }
 0x31a   :  { %v334_v55 = vpop.permute.xlu1 %333 }
 0x31b   :  { %v576_v56 = vpop.permute.xlu0 %575 }
 0x31c   :  { %809 = vmatmul.msk.bf16.vlgmr.msra.gmra.mxu0 %vm216_vm8, %v334_v55 }
 0x31e   :  { %811 = vmatmul.msk.bf16.vlgmr.msra.gmra.mxu3 %vm216_vm8, %v396_v40 }
 0x31f   :  { %653 = vmatpush.bf16.xpose.msra.mxu3 %v644_v57 }
 0x322   :  { %v460_v59 = vpop.permute.xlu1 %459 }
 0x323   :  { %v465_v60 = vsel %vm216_vm8, %v460_v59, 0  ;;  %v431_v61 = vpop.permute.xlu0 %430 }
 0x324   :  { %474 = vmatpush.bf16.xpose.msrb.mxu0 %v465_v60  ;;  %v436_v63 = vsel %vm253_vm9, %v431_v61, 0 }
 0x325   :  { %445 = vmatpush.bf16.msrb.mxu2 %v436_v63 }
 0x32a   :  { %v637_v1 = vpop.permute.xlu1 %636 }
 0x32c   :  { %592 = vmatpush.bf16.xpose.msra.mxu0 %v583_v62 }
 0x32d   :  { %813 = vmatmul.msk.bf16.vlgmr.msrb.gmra.mxu0 %vm216_vm8, %v1057_v23 }
 0x32e   :  { %815 = vmatmul.msk.bf16.vlgmr.msrb.gmra.mxu3 %vm216_vm8, %v515_v51 }
 0x33d   :  { %817 = vmatmul.msk.bf16.vlgmr.msra.gmra.mxu0 %vm216_vm8, %v576_v56 }
 0x33e   :  { %819 = vmatmul.msk.bf16.vlgmr.msra.gmra.mxu3 %vm216_vm8, %v637_v1 }
 0x389   :  { %v266_v2 = vpop.f32.mrf.mxu0 }
 0x38a   :  { %270 = vst.msk [vmem:[#allocation2] sm:$0xff] %vm216_vm8, %v266_v2 }
 0x391   :  { %v268_v4 = vpop.f32.mrf.mxu0  ;;  %v1099_v5 = vpop.f32.mrf.mxu3 }
 0x399   :  { %v325_v6 = vpop.f32.mrf.mxu3  ;;  %v352_v7 = vpop.f32.mrf.mxu0 }
 0x39a   :  { %v356_v9 = vsel %vm216_vm8, %v352_v7, -inf }
 0x39b   :  { %357 = vmax.xlane.f32.xlu2 %v356_v9 }
 0x3a1   :  { %v354_v10 = vpop.f32.mrf.mxu0  ;;  %v414_v11 = vpop.f32.mrf.mxu3 }
 0x3a2   :  { %v418_v12 = vsel %vm216_vm8, %v414_v11, -inf }
 0x3a3   :  { %419 = vmax.xlane.f32.xlu1 %v418_v12 }
 0x3a9   :  { %v416_v13 = vpop.f32.mrf.mxu3 }
 0x3aa   :  { %v476_v14 = vpop.f32.mrf.mxu0 }
 0x3ab   :  { %v480_v15 = vsel %vm216_vm8, %v476_v14, -inf }
 0x3ac   :  { %481 = vmax.xlane.f32.xlu2 %v480_v15 }
 0x3b1   :  { %v533_v17 = vpop.f32.mrf.mxu3 }
 0x3b2   :  { %v478_v16 = vpop.f32.mrf.mxu0  ;;  %v537_v18 = vsel %vm216_vm8, %v533_v17, -inf }
 0x3b3   :  { %538 = vmax.xlane.f32.xlu0 %v537_v18 }
 0x3b9   :  { %v535_v19 = vpop.f32.mrf.mxu3 }
 0x3ba   :  { %v594_v20 = vpop.f32.mrf.mxu0 }
 0x3bb   :  { %v598_v21 = vsel %vm216_vm8, %v594_v20, -inf }
 0x3bc   :  { %599 = vmax.xlane.f32.xlu0 %v598_v21 }
 0x3c1   :  { %v655_v24 = vpop.f32.mrf.mxu3 }
 0x3c2   :  { %v596_v22 = vpop.f32.mrf.mxu0  ;;  %v659_v25 = vsel %vm216_vm8, %v655_v24, -inf }
 0x3c3   :  { %660 = vmax.xlane.f32.xlu1 %v659_v25 }
 0x3c9   :  { %v657_v26 = vpop.f32.mrf.mxu3 }
 0x3d0   :  { %549 = vrot.lane.b32.xlu0 %v1057_v23, %s930_s25 }
 0x3dc   :  { %492 = vrot.lane.b32.xlu1 %v1057_v23, %s931_s26 }
 0x40e   :  { %v358_v27 = vpop.xlane.xlu2 %357 }
 0x40f   :  { %v359_v28 = vsub.f32 %v352_v7, %v358_v27 }
 0x411   :  { %v360_v29 = vmul.f32 1.442695, %v359_v28 }
 0x413   :  { %875 = vpow2.f32 %v360_v29 }
 0x416   :  { %v420_v30 = vpop.xlane.xlu1 %419 }
 0x417   :  { %v421_v31 = vsub.f32 %v414_v11, %v420_v30  ;;  %v207_v30 = vpop.f32.mrf.mxu2 }
 0x419   :  { %v876_v32 = vpop.eup %875  ;;  %v422_v33 = vmul.f32 1.442695, %v421_v31 }
 0x41a   :  { %v362_v34 = vsel %vm216_vm8, %v876_v32, 0.0 }
 0x41b   :  { %877 = vpow2.f32 %v422_v33  ;;  %363 = vadd.xlane.f32.xlu1 %v362_v34 }
 0x41f   :  { %v482_v37 = vpop.xlane.xlu2 %481  ;;  %v209_v31 = vpop.f32.mrf.mxu2 }
 0x420   :  { %v483_v40 = vsub.f32 %v476_v14, %v482_v37 }
 0x421   :  { %v878_v35 = vpop.eup %877 }
 0x422   :  { %v424_v36 = vsel %vm216_vm8, %v878_v35, 0.0  ;;  %v484_v42 = vmul.f32 1.442695, %v483_v40 }
 0x423   :  { %425 = vadd.xlane.f32.xlu2 %v424_v36 }
 0x426   :  { %v539_v38 = vpop.xlane.xlu0 %538 }
 0x427   :  { %v540_v39 = vsub.f32 %v533_v17, %v539_v38 }
 0x429   :  { %v541_v41 = vmul.f32 1.442695, %v540_v39 }
 0x42b   :  { %879 = vpow2.f32 %v541_v41 }
 0x42c   :  { %881 = vpow2.f32 %v484_v42 }
 0x42f   :  { %v600_v48 = vpop.xlane.xlu0 %599 }
 0x430   :  { %v601_v55 = vsub.f32 %v594_v20, %v600_v48  ;;  %v842_v48 = vld [vmem:[%s1156_s3] sm:$0xff] }
 0x431   :  { %v880_v43 = vpop.eup %879 }
 0x432   :  { %v543_v44 = vsel %vm216_vm8, %v880_v43, 0.0  ;;  %v882_v46 = vpop.eup %881  ;;  %v602_v56 = vmul.f32 1.442695, %v601_v55 }
 0x433   :  { %544 = vadd.xlane.f32.xlu1 %v543_v44  ;;  %v486_v50 = vsel %vm216_vm8, %v882_v46, 0.0 }
 0x436   :  { %v661_v45 = vpop.xlane.xlu1 %660 }
 0x437   :  { %v662_v47 = vsub.f32 %v655_v24, %v661_v45 }
 0x439   :  { %v663_v49 = vmul.f32 1.442695, %v662_v47  ;;  %v843_v47 = vld [vmem:[%s1156_s3 + $0x8] sm:$0xff] }
 0x43a   :  { %725 = vmatpush.bf16.msrb.mxu0 %v843_v47 }
 0x43b   :  { %883 = vpow2.f32 %v663_v49  ;;  %368 = vrot.lane.b32.xlu2 %v1039_v8, %s936_s5  ;;  %487 = vadd.xlane.f32.xlu1 %v486_v50 }
 0x43c   :  { %885 = vpow2.f32 %v602_v56 }
 0x43e   :  { %726 = vmatpush.bf16.msrb.mxu0 %v842_v48 }
 0x441   :  { %v884_v51 = vpop.eup %883 }
 0x442   :  { %v550_v52 = vpop.permute.xlu0 %549  ;;  %v665_v54 = vsel %vm216_vm8, %v884_v51, 0.0  ;;  %v886_v57 = vpop.eup %885 }
 0x443   :  { %v555_v53 = vsel %vm253_vm9, %v550_v52, 0  ;;  %666 = vadd.xlane.f32.xlu0 %v665_v54  ;;  %v604_v8 = vsel %vm216_vm8, %v886_v57, 0.0  ;;  %v208_v54 = vadd.f32 %v207_v30, %v970_v0 }
 0x444   :  { %564 = vmatpush.bf16.msra.mxu2 %v555_v53 }
 0x44e   :  { %v493_v58 = vpop.permute.xlu1 %492 }
 0x44f   :  { %v498_v4 = vsel %vm253_vm9, %v493_v58, 0 }
 0x454   :  { %671 = vrot.lane.b32.xlu1 %v1057_v23, %s935_s30 }
 0x45c   :  { %610 = vrot.lane.b32.xlu1 %v1057_v23, %s936_s5 }
 0x464   :  { %328 = vrot.lane.b32.xlu1 %v1099_v5, %s937_s6  ;;  %605 = vadd.xlane.f32.xlu2 %v604_v8 }
 0x48e   :  { %v364_v59 = vpop.xlane.xlu1 %363 }
 0x48f   :  { %887 = vrcp.f32 %v364_v59 }
 0x495   :  { %v888_v61 = vpop.eup %887 }
 0x496   :  { %v426_v60 = vpop.xlane.xlu2 %425  ;;  %v366_v63 = vmul.f32 %v888_v61, %v876_v32 }
 0x497   :  { %889 = vrcp.f32 %v426_v60 }
 0x498   :  { %v367_v7 = vpack.c.bf16 %v366_v63, %v366_v63 }
 0x49d   :  { %v890_v62 = vpop.eup %889 }
 0x49e   :  { %v428_v1 = vmul.f32 %v890_v62, %v878_v35  ;;  %v369_v2 = vpop.permute.xlu2 %368 }
 0x49f   :  { %v374_v23 = vsel %vm253_vm9, %v369_v2, 0 }
 0x4a0   :  { %383 = vmatpush.bf16.msra.mxu1 %v374_v23  ;;  %v429_v6 = vpack.c.bf16 %v428_v1, %v428_v1 }
 0x4a2   :  { %812 = vmatmul.msk.bf16.vlgmr.msrb.gmra.mxu2 %vm216_vm8, %v429_v6 }
 0x4a3   :  { %810 = vmatmul.msk.bf16.vlgmr.msra.gmra.mxu1 %vm216_vm8, %v367_v7 }
 0x4a4   :  { %507 = vmatpush.bf16.msrb.mxu1 %v498_v4 }
 0x4a6   :  { %v545_v5 = vpop.xlane.xlu1 %544 }
 0x4a7   :  { %891 = vrcp.f32 %v545_v5 }
 0x4ad   :  { %v892_v9 = vpop.eup %891 }
 0x4ae   :  { %v547_v10 = vmul.f32 %v892_v9, %v880_v43  ;;  %v488_v11 = vpop.xlane.xlu1 %487 }
 0x4af   :  { %893 = vrcp.f32 %v488_v11 }
 0x4b0   :  { %v548_v12 = vpack.c.bf16 %v547_v10, %v547_v10 }
 0x4b2   :  { %816 = vmatmul.msk.bf16.vlgmr.msra.gmra.mxu2 %vm216_vm8, %v548_v12 }
 0x4b5   :  { %v894_v13 = vpop.eup %893 }
 0x4b6   :  { %v490_v14 = vmul.f32 %v894_v13, %v882_v46  ;;  %v667_v16 = vpop.xlane.xlu0 %666 }
 0x4b7   :  { %895 = vrcp.f32 %v667_v16 }
 0x4b8   :  { %v491_v15 = vpack.c.bf16 %v490_v14, %v490_v14 }
 0x4ba   :  { %814 = vmatmul.msk.bf16.vlgmr.msrb.gmra.mxu1 %vm216_vm8, %v491_v15 }
 0x4bd   :  { %v896_v17 = vpop.eup %895 }
 0x4be   :  { %v669_v18 = vmul.f32 %v896_v17, %v884_v51 }
 0x4c0   :  { %v670_v21 = vpack.c.bf16 %v669_v18, %v669_v18 }
 0x4c6   :  { %v672_v19 = vpop.permute.xlu1 %671 }
 0x4c7   :  { %v677_v20 = vsel %vm253_vm9, %v672_v19, 0 }
 0x4c8   :  { %686 = vmatpush.bf16.msrb.mxu2 %v677_v20 }
 0x4cb   :  { %820 = vmatmul.msk.bf16.vlgmr.msrb.gmra.mxu2 %vm216_vm8, %v670_v21 }
 0x4ce   :  { %v611_v22 = vpop.permute.xlu1 %610 }
 0x4cf   :  { %v616_v24 = vsel %vm253_vm9, %v611_v22, 0 }
 0x4d0   :  { %625 = vmatpush.bf16.msra.mxu1 %v616_v24 }
 0x4d6   :  { %v329_v25 = vpop.permute.xlu1 %328 }
 0x4d7   :  { %332 = vst.msk [vmem:[#allocation2] sm:$0xff] %vm331_vm10, %v329_v25  ;;  %v606_v26 = vpop.xlane.xlu2 %605 }
 0x4d8   :  { %897 = vrcp.f32 %v606_v26 }
 0x4de   :  { %v898_v27 = vpop.eup %897 }
 0x4df   :  { %v608_v28 = vmul.f32 %v898_v27, %v886_v57  ;;  %v210_v57 = vadd.f32 %v209_v31, %v979_v3 }
 0x4e1   :  { %v609_v29 = vpack.c.bf16 %v608_v28, %v608_v28 }
 0x4e3   :  { %818 = vmatmul.msk.bf16.vlgmr.msra.gmra.mxu1 %vm216_vm8, %v609_v29 }
 0x520   :  { %v385_v32 = vpop.f32.mrf.mxu1 }
 0x521   :  { %390 = vrot.lane.b32.xlu2 %v385_v32, %s938_s7 }
 0x525   :  { %v447_v33 = vpop.f32.mrf.mxu2 }
 0x526   :  { %452 = vrot.lane.b32.xlu1 %v447_v33, %s939_s8 }
 0x528   :  { %v387_v34 = vpop.f32.mrf.mxu1 }
 0x52d   :  { %v449_v35 = vpop.f32.mrf.mxu2 }
 0x535   :  { %v566_v36 = vpop.f32.mrf.mxu2 }
 0x536   :  { %571 = vrot.lane.b32.xlu0 %v566_v36, %s937_s6 }
 0x537   :  { %v509_v37 = vpop.f32.mrf.mxu1 }
 0x538   :  { %513 = vst.msk [vmem:[#allocation2 + $0x8] sm:$0xff] %vm216_vm8, %v509_v37 }
 0x53d   :  { %v568_v38 = vpop.f32.mrf.mxu2 }
 0x53f   :  { %v511_v39 = vpop.f32.mrf.mxu1 }
 0x54e   :  { %v688_v40 = vpop.f32.mrf.mxu2 }
 0x556   :  { %v690_v41 = vpop.f32.mrf.mxu2 }
 0x560   :  { %v627_v42 = vpop.f32.mrf.mxu1 }
 0x561   :  { %632 = vrot.lane.b32.xlu1 %v627_v42, %s938_s7 }
 0x568   :  { %v629_v43 = vpop.f32.mrf.mxu1 }
 0x569   :  { %693 = vrot.lane.b32.xlu1 %v688_v40, %s939_s8 }
 0x57b   :  { %v391_v44 = vpop.permute.xlu2 %390 }
 0x57c   :  { %394 = vst.msk [vmem:[#allocation2] sm:$0xff] %vm393_vm11, %v391_v44 }
 0x598   :  { %v453_v45 = vpop.permute.xlu1 %452 }
 0x599   :  { %456 = vst.msk [vmem:[#allocation2] sm:$0xff] %vm455_vm12, %v453_v45 }
 0x5a0   :  { %v697_v51 = vld [vmem:[#allocation2] sm:$0xff] }
 0x5a8   :  { %v572_v46 = vpop.permute.xlu0 %571 }
 0x5a9   :  { %574 = vst.msk [vmem:[#allocation2 + $0x8] sm:$0xff] %vm331_vm10, %v572_v46 }
 0x5d3   :  { %v633_v49 = vpop.permute.xlu1 %632 }
 0x5d4   :  { %635 = vst.msk [vmem:[#allocation2 + $0x8] sm:$0xff] %vm393_vm11, %v633_v49 }
 0x5db   :  { %v694_v50 = vpop.permute.xlu1 %693 }
 0x5dc   :  { %696 = vst.msk [vmem:[#allocation2 + $0x8] sm:$0xff] %vm455_vm12, %v694_v50 }
 0x5e3   :  { %v698_v52 = vld [vmem:[#allocation2 + $0x8] sm:$0xff] }
 0x5e4   :  { %v699_v53 = vpack.c.bf16 %v698_v52, %v697_v51 }
 0x5e6   :  { %829 = vmatmul.msk.bf16.vlgmr.msrb.gmra.mxu0 %vm21_vm0, %v699_v53 }
 0x663   :  { %v728_v55 = vpop.f32.mrf.mxu0 }
 0x664   :  { %v733_v56 = vadd.f32 %v728_v55, %v208_v54 }
 0x666   :  { %735 = vst.msk [vmem:[#allocation3] sm:$0xff] %vm21_vm0, %v733_v56 }
 0x66b   :  { %v730_v8 = vpop.f32.mrf.mxu0 }
 0x66c   :  { %v734_v58 = vadd.f32 %v730_v8, %v210_v57 }
 0x66e   :  { %736 = vst.msk [vmem:[#allocation3 + $0x8] sm:$0xff] %vm21_vm0, %v734_v58 }
 0x66f   :  { %749 = dma.vmem_to_hbm [thread:$0]  %s742_s13, 256, %s744_s15, [#allocation4], %s941_s16, %s941_s16, %s937_s6  }
 0x670   :  { %923 = dma.done.wait [#allocation4], 256  }
 0x671   :  { %924 = vsyncadd [#allocation4], 4294967040 }
 0x672   :  { %754 = vsyncpa [#allocation4], 1 }

</bundles_post_ra>
